<compile_context>
chip_gen: v7x
topology: tpu7x:2x2x1
jax: 0.10.0
libtpu: 0.0.40
codegen_flags: <defaults>
</compile_context>

<pallas_src>
import math

import jax
import jax.numpy as jnp
from jax.experimental import pallas as pl
from jax.experimental.pallas import tpu as pltpu


def _converter_kernel(x_ref, w_ref, b_ref, o_ref):
    # x_ref: (block_rows, Df)  fold*D-wide lane-dense pose rows
    # w_ref: (Df, Df)          kron(I_fold, W_fused)  (residual +I folded in)
    # b_ref: (1, Df)           fused bias tiled `fold` times
    o_ref[...] = (
        jnp.dot(x_ref[...], w_ref[...], preferred_element_type=jnp.float32)
        + b_ref[...]
    )


def _choose_fold(D, lane=128, max_width=2048):
    """Smallest fold so fold*D is a multiple of the 128-lane width."""
    Df = math.lcm(D, lane)
    if Df > max_width:
        return 1  # fall back to native width (partial lanes) for huge D
    return Df // D


def fuse_params(wx, bx, wy, by, wz, bz, *, fold=8):
    """Fold the 3 per-channel linears + residual into one lane-dense weight/bias.

    Returns:
      w_bd: (fold*D, fold*D) = kron(I_fold, W_fused), W_fused = interleaved
            block-diagonal of the three channel weights (transposed) + I.
      b_bd: (1, fold*D) fused bias tiled `fold` times.
    Done once; hoisted out of the per-call path.
    """
    J = wx.shape[0]
    D = 3 * J
    # wt[j_in, j_out, c] = W_c[j_out, j_in]   (W_c^T stacked on channel axis)
    wt = jnp.stack([wx.T, wy.T, wz.T], axis=-1).astype(jnp.float32)  # (J, J, 3)
    eye3 = jnp.eye(3, dtype=jnp.float32)
    # w4[j_in, c, j_out, d] = W_c[j_out, j_in] * delta(c, d)
    w4 = jnp.einsum("ioc,cd->icod", wt, eye3)
    w_fused = w4.reshape(D, D) + jnp.eye(D, dtype=jnp.float32)  # fold residual
    b_fused = jnp.stack([bx, by, bz], axis=-1).reshape(D).astype(jnp.float32)

    w_bd = jnp.kron(jnp.eye(fold, dtype=jnp.float32), w_fused)   # (fold*D, fold*D)
    b_bd = jnp.tile(b_fused, fold).reshape(1, fold * D)
    return w_bd, b_bd


def map_pose_converter(x, w_bd, b_bd, *, fold=8, max_block_rows=1024,
                       min_pallas_batch=4096):
    """out = x + concat_c(linear_c(x[:, :, c])) as one lane-dense fused matmul.

    x: (B, D) with D = 3 * joint_num, interleaved xyz layout (native layout
    of the PyTorch module — no wrapper-side channel transposes needed).
    """
    B, D = x.shape
    Df = fold * D
    assert w_bd.shape == (Df, Df) and b_bd.shape == (1, Df)
    assert max_block_rows % 8 == 0

    x = x.astype(jnp.float32)

    # Small-batch fast path: trivial XLA fusion beats a pallas_call launch.
    if B < min_pallas_batch:
        w_fused = w_bd[:D, :D]     # first diagonal block (includes +I)
        b_fused = b_bd[0, :D]
        return x @ w_fused + b_fused

    return _map_pose_converter_pallas(x, w_bd, b_bd, fold=fold,
                                      max_block_rows=max_block_rows)


def _map_pose_converter_pallas(x, w_bd, b_bd, *, fold, max_block_rows):
    B, D = x.shape
    Df = fold * D

    # Fold `fold` consecutive batch rows into one lane-dense row of width Df.
    rows = -(-B // fold)
    if rows <= max_block_rows:
        block_rows = rows            # full-extent block (escapes (8,128) rule)
        rows_pad = rows
    else:
        block_rows = max_block_rows  # multiple of 8
        rows_pad = -(-rows // block_rows) * block_rows
    B_pad = rows_pad * fold
    if B_pad != B:
        x = jnp.pad(x, ((0, B_pad - B), (0, 0)))
    xf = x.reshape(rows_pad, Df)

    grid = (rows_pad // block_rows,)

    cost = pl.CostEstimate(
        flops=2 * rows_pad * Df * Df,
        transcendentals=0,
        bytes_accessed=4 * (2 * rows_pad * Df + Df * Df + Df),
    )

    out_f = pl.pallas_call(
        _converter_kernel,
        out_shape=jax.ShapeDtypeStruct((rows_pad, Df), jnp.float32),
        grid_spec=pltpu.PrefetchScalarGridSpec(
            num_scalar_prefetch=0,
            grid=grid,
            in_specs=[
                pl.BlockSpec((block_rows, Df), lambda i: (i, 0)),
                pl.BlockSpec((Df, Df), lambda i: (0, 0)),   # resident weight
                pl.BlockSpec((1, Df), lambda i: (0, 0)),    # resident bias
            ],
            out_specs=pl.BlockSpec((block_rows, Df), lambda i: (i, 0)),
        ),
        compiler_params=pltpu.CompilerParams(
            dimension_semantics=("parallel",),
            vmem_limit_bytes=32 * 1024 * 1024,
        ),
        cost_estimate=cost,
    )(xf, w_bd, b_bd)

    return out_f.reshape(B_pad, D)[:B]


def _reference(x, wx, bx, wy, by, wz, bz):
    """Pure-JAX reference mirroring the PyTorch forward."""
    B, data_size = x.shape
    J = data_size // 3
    sep = x.reshape(B, J, 3)
    xx, xy, xz = sep[:, :, 0], sep[:, :, 1], sep[:, :, 2]
    yx = xx @ wx.T + bx
    yy = xy @ wy.T + by
    yz = xz @ wz.T + bz
    y = jnp.stack([yx, yy, yz], axis=2).reshape(B, data_size)
    return x + y


if __name__ == "__main__":
    # data_size = 48 => joint_num J = 16, demo batch B = 2.
    J = 16
    data_size = 3 * J

    key = jax.random.PRNGKey(0)
    kx1, kx2, kwx, kbx, kwy, kby, kwz, kbz = jax.random.split(key, 8)

    # Deterministic nn.Linear-like uniform init.
    scale = 1.0 / jnp.sqrt(J)
    wx = jax.random.uniform(kwx, (J, J), jnp.float32, -scale, scale)
    bx = jax.random.uniform(kbx, (J,), jnp.float32, -scale, scale)
    wy = jax.random.uniform(kwy, (J, J), jnp.float32, -scale, scale)
    by = jax.random.uniform(kby, (J,), jnp.float32, -scale, scale)
    wz = jax.random.uniform(kwz, (J, J), jnp.float32, -scale, scale)
    bz = jax.random.uniform(kbz, (J,), jnp.float32, -scale, scale)

    fold = _choose_fold(data_size)               # 8 -> 384 = 3 * 128 lanes
    w_bd, b_bd = fuse_params(wx, bx, wy, by, wz, bz, fold=fold)
    w_bd, b_bd = jax.block_until_ready((w_bd, b_bd))

    # (1) Demo shape B=2: force the Pallas path (single full-extent block).
    B1 = 2
    x1 = jax.random.normal(kx1, (B1, data_size), dtype=jnp.float32)
    out1 = jax.block_until_ready(
        map_pose_converter(x1, w_bd, b_bd, fold=fold, min_pallas_batch=0))
    ref1 = _reference(x1, wx, bx, wy, by, wz, bz)
    assert out1.shape == (B1, data_size)
    assert jnp.allclose(out1, ref1, atol=1e-5, rtol=1e-5)

    # (2) Ragged batch + multi-step grid (exercises padding and tiling):
    #     B=522 is not a multiple of fold*block_rows; small block to get 5 steps.
    B2 = 522
    x2 = jax.random.normal(kx2, (B2, data_size), dtype=jnp.float32)
    out2 = jax.block_until_ready(
        map_pose_converter(x2, w_bd, b_bd, fold=fold,
                           max_block_rows=16, min_pallas_batch=0))
    ref2 = _reference(x2, wx, bx, wy, by, wz, bz)
    assert out2.shape == (B2, data_size)
    assert jnp.allclose(out2, ref2, atol=1e-5, rtol=1e-5)

    # (3) Small-batch fast path (default threshold skips Pallas at B=2).
    out3 = jax.block_until_ready(map_pose_converter(x1, w_bd, b_bd, fold=fold))
    assert jnp.allclose(out3, ref1, atol=1e-5, rtol=1e-5)

    print("KERNEL_OK")
</pallas_src>

<mosaic_0001>
module attributes {stable_mosaic.version = 11 : i64} {
  func.func @_converter_kernel(%arg0: i32, %arg1: memref<1x384xf32, #tpu.memory_space<vmem>>, %arg2: memref<384x384xf32, #tpu.memory_space<vmem>>, %arg3: memref<1x384xf32, #tpu.memory_space<vmem>>, %arg4: memref<1x384xf32, #tpu.memory_space<vmem>>) attributes {dimension_semantics = [#tpu.dimension_semantics<parallel>], iteration_bounds = array<i64: 1>, scalar_prefetch = 0 : i64, scratch_operands = 0 : i64, tpu.core_type = #tpu.core_type<tc>, window_params = [{transform_indices = @transform_0, window_bounds = array<i64: 1, 384>}, {pipeline_mode = #tpu.pipeline_mode<synchronous>, transform_indices = @transform_1, window_bounds = array<i64: 384, 384>}, {pipeline_mode = #tpu.pipeline_mode<synchronous>, transform_indices = @transform_2, window_bounds = array<i64: 1, 384>}, {transform_indices = @transform_3, window_bounds = array<i64: 1, 384>}]} {
    %c0 = arith.constant 0 : index
    %c0_0 = arith.constant 0 : index
    %0 = vector.load %arg1[%c0, %c0_0] : memref<1x384xf32, #tpu.memory_space<vmem>>, vector<1x384xf32>
    %c0_1 = arith.constant 0 : index
    %c0_2 = arith.constant 0 : index
    %1 = vector.load %arg2[%c0_1, %c0_2] : memref<384x384xf32, #tpu.memory_space<vmem>>, vector<384x384xf32>
    %cst = arith.constant dense<0.000000e+00> : vector<1x384xf32>
    %2 = tpu.matmul %0, %1, %cst {dimension_numbers = #tpu.dot_dimension_numbers<[1], [0], [0], [1], [0, 0, 1, 1], [], []>} : vector<1x384xf32>, vector<384x384xf32>, vector<1x384xf32> -> vector<1x384xf32>
    %c0_3 = arith.constant 0 : index
    %c0_4 = arith.constant 0 : index
    %3 = vector.load %arg3[%c0_3, %c0_4] : memref<1x384xf32, #tpu.memory_space<vmem>>, vector<1x384xf32>
    %4 = arith.addf %2, %3 : vector<1x384xf32>
    %c0_5 = arith.constant 0 : index
    %c0_6 = arith.constant 0 : index
    %5 = vector.load %arg4[%c0_5, %c0_6] : memref<1x384xf32, #tpu.memory_space<vmem>>, vector<1x384xf32>
    tpu.vector_store %arg4[%c0_5, %c0_6], %4 {strides = array<i32>} : memref<1x384xf32, #tpu.memory_space<vmem>>, vector<1x384xf32>,
    return
  }
  func.func @transform_0(%arg0: i32) -> (i32, i32) {
    %c0_i32 = arith.constant 0 : i32
    %c0_i32_0 = arith.constant 0 : i32
    return %arg0, %c0_i32 : i32, i32
  }
  func.func @transform_1(%arg0: i32) -> (i32, i32) {
    %c0_i32 = arith.constant 0 : i32
    %c0_i32_0 = arith.constant 0 : i32
    %c0_i32_1 = arith.constant 0 : i32
    return %c0_i32, %c0_i32_0 : i32, i32
  }
  func.func @transform_2(%arg0: i32) -> (i32, i32) {
    %c0_i32 = arith.constant 0 : i32
    %c0_i32_0 = arith.constant 0 : i32
    %c0_i32_1 = arith.constant 0 : i32
    return %c0_i32, %c0_i32_0 : i32, i32
  }
  func.func @transform_3(%arg0: i32) -> (i32, i32) {
    %c0_i32 = arith.constant 0 : i32
    %c0_i32_0 = arith.constant 0 : i32
    return %arg0, %c0_i32 : i32, i32
  }
}

</mosaic_0001>

<bundles_post_ra>
// kernel: tpu_custom_call.1
= control target key start
LH: loop header
LB: loop body
LE: loop exit
PB: predicated region body
PF: predicated region fallthrough
CT: control target
= control target key end

     0   :  { %8 = vsyncpa [#allocation3], 0  ;;  %s987_s0 = inlined_call_operand.hbm [shape: f32[1,384], index: 0, kind: input, shape index: {}]   ;;  %s988_s1 = inlined_call_operand.hbm [shape: f32[384,384], index: 1, kind: input, shape index: {}]   ;;  %s989_s2 = inlined_call_operand.vmem [shape: f32[1,384], index: 2, kind: input, shape index: {}]   ;;  %s990_s3 = inlined_call_operand.hbm [shape: f32[1,384], index: 3, kind: output, shape index: {}]  }
   0x1   :  { %9 = vsyncpa [#allocation6], 0 }
   0x2   :  { %10 = vsyncpa [#allocation4], 0  ;;  %s873_s12 = smov [#allocation2]   ;;  %s874_s14 = smov [#allocation5]  }
   0x3   :  { %s17_s13 = sshll.u32 %s873_s12, 4  ;;  %s26_s15 = sshll.u32 %s874_s14, 4  ;;  %s18_s13 = int_to_ptr.vmem [resolvable:$true] %s17_s13  ;;  %s902_s15 = int_to_ptr.vmem [resolvable:$true] %s26_s15 }
   0x4   :  { %s801_s18 = scalar_lea.hbm %s987_s0, 48 }
   0x5   :  { %p802_p0 = scmp.ne.s32.totalorder %s987_s0, %s801_s18  ;;  %p805_p1 = scmp.lt.u32.totalorder %s801_s18, %s987_s0 }
   0x7   :  { %p807_p2 = pnand %p805_p1, %p802_p0 }
   0x9   :  { %810 = shalt.err (!%p807_p2)
}
   0xa   :  { %s811_s23 = scalar_lea.vmem %s18_s13, 48  ;;  %s815_s24 = scalar_lea.vmem %s18_s13, 64 }
   0xb   :  { %p812_p3 = scmp.ne.s32.totalorder %s18_s13, %s811_s23  ;;  %p816_p4 = scmp.lt.s32.totalorder %s18_s13, %s18_s13 }
   0xc   :  { %p817_p5 = scmp.lt.s32.totalorder %s815_s24, %s811_s23 }
   0xe   :  { %p818_p6 = por %p817_p5, %p816_p4 }
  0x10   :  { %p819_p7 = pnand %p818_p6, %p812_p3 }
  0x12   :  { %822 = shalt.err (!%p819_p7)
}
  0x13   :  { %20 = dma.hbm_to_vmem [thread:$0]  %s987_s0, 48, %s18_s13, [#allocation3]  }
  0x14   :  { %s823_s29 = scalar_lea.hbm %s988_s1, 18432 }
  0x15   :  { %p824_p8 = scmp.ne.s32.totalorder %s988_s1, %s823_s29  ;;  %p827_p9 = scmp.lt.u32.totalorder %s823_s29, %s988_s1 }
  0x17   :  { %p829_p10 = pnand %p827_p9, %p824_p8 }
  0x19   :  { %832 = shalt.err (!%p829_p10)
}
  0x1a   :  { %s833_s7 = scalar_lea.vmem %s902_s15, 18432  ;;  %p838_p12 = scmp.lt.s32.totalorder %s902_s15, %s902_s15 }
  0x1b   :  { %p834_p11 = scmp.ne.s32.totalorder %s902_s15, %s833_s7  ;;  %p839_p13 = scmp.lt.s32.totalorder %s833_s7, %s833_s7 }
  0x1d   :  { %p840_p0 = por %p839_p13, %p838_p12 }
  0x1f   :  { %p841_p1 = pnand %p840_p0, %p834_p11 }
  0x21   :  { %844 = shalt.err (!%p841_p1)
}
  0x22   :  { %s875_s0 = smov 384   ;;  %s876_s8 = smov 24  }
  0x23   :  { %32 = dma.hbm_to_vmem [thread:$0]  %s988_s1, 18432, %s902_s15, [#allocation6], %s875_s0, %s875_s0, %s876_s8  }
  0x24   :  { %867 = dma.done.wait [#allocation3], 48  }
  0x25   :  { %868 = vsyncadd [#allocation3], 4294967248 }
  0x26   :  { %869 = dma.done.wait [#allocation6], 18432  }
  0x27   :  { %870 = vsyncadd [#allocation6], 4294948864  ;;  %v43_v0 = vld [vmem:[#allocation5 + $0x8] sm:$0xff]  ;;  %v46_v1 = vld [vmem:[#allocation5 + $0x20] sm:$0xff]  ;;  %v188_v53 = vlaneseq  ;;  %vm878_vm0 = vmmov 0  }
  0x28   :  { %v42_v2 = vld [vmem:[#allocation5] sm:$0xff]  ;;  %v636_v3 = vpack.c.bf16 %v46_v1, %v43_v0  ;;  %v45_v4 = vld [vmem:[#allocation5 + $0x18] sm:$0xff]  ;;  %v52_v6 = vld [vmem:[#allocation5 + $0x50] sm:$0xff] }
  0x29   :  { %v49_v5 = vld [vmem:[#allocation5 + $0x38] sm:$0xff]  ;;  %v638_v7 = vpack.c.bf16 %v45_v4, %v42_v2  ;;  %v48_v9 = vld [vmem:[#allocation5 + $0x30] sm:$0xff]  ;;  %v51_v10 = vld [vmem:[#allocation5 + $0x48] sm:$0xff]  ;;  %v934_v2 = vshrl.u32 %v188_v53, 7  ;;  %vm530_vm1 = vcmp.lt.s32.totalorder %v188_v53, 384 }
  0x2a   :  { %v640_v8 = vpack.c.bf16 %v52_v6, %v49_v5  ;;  %v55_v11 = vld [vmem:[#allocation5 + $0x68] sm:$0xff]  ;;  %637 = vmatprep.subr.bf16.mxu0 %v636_v3  ;;  %v58_v12 = vld [vmem:[#allocation5 + $0x80] sm:$0xff]  ;;  %v92_v13 = vld [vmem:[#allocation5 + $0x190] sm:$0xff]  ;;  %v642_v15 = vpack.c.bf16 %v51_v10, %v48_v9 }
  0x2b   :  { %v95_v14 = vld [vmem:[#allocation5 + $0x1a8] sm:$0xff]  ;;  %639 = vmatpush1.bf16.msra.mxu0 %v638_v7  ;;  %v54_v17 = vld [vmem:[#allocation5 + $0x60] sm:$0xff]  ;;  %v44_v18 = vld [vmem:[#allocation5 + $0x10] sm:$0xff]  ;;  %v644_v19 = vpack.c.bf16 %v58_v12, %v55_v11 }
  0x2c   :  { %v732_v16 = vpack.c.bf16 %v95_v14, %v92_v13  ;;  %641 = vmatprep.subr.bf16.mxu0 %v640_v8  ;;  %v57_v20 = vld [vmem:[#allocation5 + $0x78] sm:$0xff]  ;;  %v47_v21 = vld [vmem:[#allocation5 + $0x28] sm:$0xff]  ;;  %v64_v24 = vld [vmem:[#allocation5 + $0xb0] sm:$0xff] }
  0x2d   :  { %v61_v22 = vld [vmem:[#allocation5 + $0x98] sm:$0xff]  ;;  %v734_v23 = vpack.c.bf16 %v47_v21, %v44_v18  ;;  %v98_v25 = vld [vmem:[#allocation5 + $0x1c0] sm:$0xff]  ;;  %v646_v30 = vpack.c.bf16 %v57_v20, %v54_v17  ;;  %v60_v31 = vld [vmem:[#allocation5 + $0x90] sm:$0xff] }
  0x2e   :  { %733 = vmatprep.subr.bf16.mxu1 %v732_v16  ;;  %v101_v26 = vld [vmem:[#allocation5 + $0x1d8] sm:$0xff]  ;;  %v50_v28 = vld [vmem:[#allocation5 + $0x40] sm:$0xff]  ;;  %v104_v33 = vld [vmem:[#allocation5 + $0x1f0] sm:$0xff]  ;;  %v648_v34 = vpack.c.bf16 %v64_v24, %v61_v22 }
  0x2f   :  { %v736_v27 = vpack.c.bf16 %v101_v26, %v98_v25  ;;  %v53_v29 = vld [vmem:[#allocation5 + $0x58] sm:$0xff]  ;;  %643 = vmatpush1.bf16.msra.mxu0 %v642_v15  ;;  %735 = vmatpush3.bf16.msra.mxu1 %v734_v23  ;;  %v63_v35 = vld [vmem:[#allocation5 + $0xa8] sm:$0xff]  ;;  %v70_v38 = vld [vmem:[#allocation5 + $0xe0] sm:$0xff]  ;;  %v194_v15 = vsub.s32 1, %v934_v2 }
  0x30   :  { %v738_v32 = vpack.c.bf16 %v53_v29, %v50_v28  ;;  %645 = vmatprep.subr.bf16.mxu0 %v644_v19  ;;  %v67_v36 = vld [vmem:[#allocation5 + $0xc8] sm:$0xff]  ;;  %v56_v40 = vld [vmem:[#allocation5 + $0x70] sm:$0xff]  ;;  %v110_v42 = vld [vmem:[#allocation5 + $0x220] sm:$0xff]  ;;  %v650_v44 = vpack.c.bf16 %v63_v35, %v60_v31 }
  0x31   :  { %737 = vmatprep.subr.bf16.mxu1 %v736_v27  ;;  %v107_v37 = vld [vmem:[#allocation5 + $0x208] sm:$0xff]  ;;  %v113_v43 = vld [vmem:[#allocation5 + $0x238] sm:$0xff]  ;;  %v66_v45 = vld [vmem:[#allocation5 + $0xc0] sm:$0xff]  ;;  %v652_v48 = vpack.c.bf16 %v70_v38, %v67_v36 }
  0x32   :  { %v740_v39 = vpack.c.bf16 %v107_v37, %v104_v33  ;;  %v59_v41 = vld [vmem:[#allocation5 + $0x88] sm:$0xff]  ;;  %v69_v46 = vld [vmem:[#allocation5 + $0xd8] sm:$0xff]  ;;  %v744_v50 = vpack.c.bf16 %v113_v43, %v110_v42  ;;  %v62_v51 = vld [vmem:[#allocation5 + $0xa0] sm:$0xff]  ;;  %v190_v43 = vsub.s32 0, %v934_v2 }
  0x33   :  { %647 = vmatpush1.bf16.msra.mxu0 %v646_v30  ;;  %739 = vmatpush3.bf16.msra.mxu1 %v738_v32  ;;  %v742_v47 = vpack.c.bf16 %v59_v41, %v56_v40  ;;  %v73_v49 = vld [vmem:[#allocation5 + $0xf8] sm:$0xff]  ;;  %v76_v54 = vld [vmem:[#allocation5 + $0x110] sm:$0xff]  ;;  %v119_v56 = vld [vmem:[#allocation5 + $0x268] sm:$0xff]  ;;  %v654_v57 = vpack.c.bf16 %v69_v46, %v66_v45 }
  0x34   :  { %649 = vmatprep.subr.bf16.mxu0 %v648_v34  ;;  %741 = vmatprep.subr.bf16.mxu1 %v740_v39  ;;  %v65_v52 = vld [vmem:[#allocation5 + $0xb8] sm:$0xff]  ;;  %v116_v55 = vld [vmem:[#allocation5 + $0x250] sm:$0xff]  ;;  %v75_v59 = vld [vmem:[#allocation5 + $0x108] sm:$0xff]  ;;  %v656_v61 = vpack.c.bf16 %v76_v54, %v73_v49 }
  0x35   :  { %v72_v58 = vld [vmem:[#allocation5 + $0xf0] sm:$0xff]  ;;  %v746_v60 = vpack.c.bf16 %v65_v52, %v62_v51  ;;  %v79_v62 = vld [vmem:[#allocation5 + $0x128] sm:$0xff]  ;;  %v748_v63 = vpack.c.bf16 %v119_v56, %v116_v55  ;;  %v82_v3 = vld [vmem:[#allocation5 + $0x140] sm:$0xff] }
  0x36   :  { %v68_v0 = vld [vmem:[#allocation5 + $0xd0] sm:$0xff]  ;;  %v71_v1 = vld [vmem:[#allocation5 + $0xe8] sm:$0xff]  ;;  %v122_v4 = vld [vmem:[#allocation5 + $0x280] sm:$0xff]  ;;  %v658_v6 = vpack.c.bf16 %v75_v59, %v72_v58  ;;  %v660_v10 = vpack.c.bf16 %v82_v3, %v79_v62  ;;  %v877_v59 = vmov 0.0|0.0  }
  0x37   :  { %651 = vmatpush1.bf16.msra.mxu0 %v650_v44  ;;  %743 = vmatpush3.bf16.msra.mxu1 %v742_v47  ;;  %v125_v5 = vld [vmem:[#allocation5 + $0x298] sm:$0xff]  ;;  %v78_v7 = vld [vmem:[#allocation5 + $0x120] sm:$0xff]  ;;  %v750_v9 = vpack.c.bf16 %v71_v1, %v68_v0  ;;  %v88_v16 = vld [vmem:[#allocation5 + $0x170] sm:$0xff] }
  0x38   :  { %653 = vmatprep.subr.bf16.mxu0 %v652_v48  ;;  %745 = vmatprep.subr.bf16.mxu1 %v744_v50  ;;  %v81_v8 = vld [vmem:[#allocation5 + $0x138] sm:$0xff]  ;;  %v752_v12 = vpack.c.bf16 %v125_v5, %v122_v4  ;;  %v74_v13 = vld [vmem:[#allocation5 + $0x100] sm:$0xff]  ;;  %v128_v17 = vld [vmem:[#allocation5 + $0x2b0] sm:$0xff] }
  0x39   :  { %v85_v11 = vld [vmem:[#allocation5 + $0x158] sm:$0xff]  ;;  %v131_v18 = vld [vmem:[#allocation5 + $0x2c8] sm:$0xff]  ;;  %v662_v19 = vpack.c.bf16 %v81_v8, %v78_v7  ;;  %v84_v20 = vld [vmem:[#allocation5 + $0x150] sm:$0xff] }
  0x3a   :  { %v77_v14 = vld [vmem:[#allocation5 + $0x118] sm:$0xff]  ;;  %v87_v21 = vld [vmem:[#allocation5 + $0x168] sm:$0xff]  ;;  %v664_v24 = vpack.c.bf16 %v88_v16, %v85_v11  ;;  %v756_v26 = vpack.c.bf16 %v131_v18, %v128_v17  ;;  %v80_v27 = vld [vmem:[#allocation5 + $0x130] sm:$0xff]  ;;  %v879_v11 = vmov 0.0  }
  0x3b   :  { %655 = vmatpush1.bf16.msra.mxu0 %v654_v57  ;;  %747 = vmatpush3.bf16.msra.mxu1 %v746_v60  ;;  %v754_v22 = vpack.c.bf16 %v77_v14, %v74_v13  ;;  %v937_v23 = vld [vmem:[#allocation2] sm:$0x7]  ;;  %v91_v25 = vld [vmem:[#allocation5 + $0x188] sm:$0xff]  ;;  %v94_v30 = vld [vmem:[#allocation5 + $0x1a0] sm:$0xff]  ;;  %v666_v33 = vpack.c.bf16 %v87_v21, %v84_v20 }
  0x3c   :  { %657 = vmatprep.subr.bf16.mxu0 %v656_v61  ;;  %749 = vmatprep.subr.bf16.mxu1 %v748_v63  ;;  %v83_v28 = vld [vmem:[#allocation5 + $0x148] sm:$0xff]  ;;  %v195_v29 = vrot.slane %v937_v23, %v194_v15  ;;  %v134_v31 = vld [vmem:[#allocation5 + $0x2e0] sm:$0xff]  ;;  %v137_v32 = vld [vmem:[#allocation5 + $0x2f8] sm:$0xff]  ;;  %v668_v36 = vpack.c.bf16 %v94_v30, %v91_v25  ;;  %v946_v54 = vrot.slane %v937_v23, %v190_v43 }
  0x3d   :  { %v90_v34 = vld [vmem:[#allocation5 + $0x180] sm:$0xff]  ;;  %v758_v35 = vpack.c.bf16 %v83_v28, %v80_v27  ;;  %v93_v37 = vld [vmem:[#allocation5 + $0x198] sm:$0xff]  ;;  %v760_v38 = vpack.c.bf16 %v137_v32, %v134_v31  ;;  %v100_v42 = vld [vmem:[#allocation5 + $0x1d0] sm:$0xff] }
  0x3e   :  { %425 = vmatprep.mubr.f32.mxu1 %v195_v29  ;;  %283 = vmatprep.mubr.f32.mxu0 %v195_v29  ;;  %v86_v39 = vld [vmem:[#allocation5 + $0x160] sm:$0xff]  ;;  %v89_v40 = vld [vmem:[#allocation5 + $0x178] sm:$0xff]  ;;  %v670_v44 = vpack.c.bf16 %v93_v37, %v90_v34  ;;  %v96_v45 = vld [vmem:[#allocation5 + $0x1b0] sm:$0xff] }
  0x3f   :  { %659 = vmatpush1.bf16.msra.mxu0 %v658_v6  ;;  %751 = vmatpush3.bf16.msra.mxu1 %v750_v9  ;;  %v97_v41 = vld [vmem:[#allocation5 + $0x1b8] sm:$0xff]  ;;  %v762_v46 = vpack.c.bf16 %v89_v40, %v86_v39  ;;  %v99_v48 = vld [vmem:[#allocation5 + $0x1c8] sm:$0xff]  ;;  %v140_v49 = vld [vmem:[#allocation5 + $0x310] sm:$0xff] }
  0x40   :  { %661 = vmatprep.subr.bf16.mxu0 %v660_v10  ;;  %753 = vmatprep.subr.bf16.mxu1 %v752_v12  ;;  %v672_v47 = vpack.c.bf16 %v100_v42, %v97_v41  ;;  %v143_v50 = vld [vmem:[#allocation5 + $0x328] sm:$0xff]  ;;  %v106_v52 = vld [vmem:[#allocation5 + $0x200] sm:$0xff]  ;;  %v674_v55 = vpack.c.bf16 %v99_v48, %v96_v45  ;;  %v105_v60 = vld [vmem:[#allocation5 + $0x1f8] sm:$0xff] }
  0x41   :  { %v103_v51 = vld [vmem:[#allocation5 + $0x1e8] sm:$0xff]  ;;  %v102_v56 = vld [vmem:[#allocation5 + $0x1e0] sm:$0xff]  ;;  %v765_v57 = vpack.c.bf16 %v143_v50, %v140_v49  ;;  %v149_v62 = vld [vmem:[#allocation5 + $0x358] sm:$0xff] }
  0x42   :  { %v676_v58 = vpack.c.bf16 %v106_v52, %v103_v51  ;;  %v146_v61 = vld [vmem:[#allocation5 + $0x340] sm:$0xff]  ;;  %v109_v63 = vld [vmem:[#allocation5 + $0x218] sm:$0xff]  ;;  %v112_v0 = vld [vmem:[#allocation5 + $0x230] sm:$0xff]  ;;  %v678_v1 = vpack.c.bf16 %v105_v60, %v102_v56 }
  0x43   :  { %663 = vmatpush1.bf16.msra.mxu0 %v662_v19  ;;  %755 = vmatpush3.bf16.msra.mxu1 %v754_v22  ;;  %v108_v3 = vld [vmem:[#allocation5 + $0x210] sm:$0xff]  ;;  %v768_v4 = vpack.c.bf16 %v149_v62, %v146_v61  ;;  %v680_v5 = vpack.c.bf16 %v112_v0, %v109_v63  ;;  %v111_v6 = vld [vmem:[#allocation5 + $0x228] sm:$0xff]  ;;  %v118_v10 = vld [vmem:[#allocation5 + $0x260] sm:$0xff]  ;;  %v198_v63 = vsub.s32 2, %v934_v2 }
  0x44   :  { %665 = vmatprep.subr.bf16.mxu0 %v664_v24  ;;  %757 = vmatprep.subr.bf16.mxu1 %v756_v26  ;;  %v152_v7 = vld [vmem:[#allocation5 + $0x370] sm:$0xff]  ;;  %v155_v8 = vld [vmem:[#allocation5 + $0x388] sm:$0xff]  ;;  %v682_v12 = vpack.c.bf16 %v111_v6, %v108_v3  ;;  %v114_v13 = vld [vmem:[#allocation5 + $0x240] sm:$0xff] }
  0x45   :  { %v115_v9 = vld [vmem:[#allocation5 + $0x248] sm:$0xff]  ;;  %v771_v14 = vpack.c.bf16 %v155_v8, %v152_v7  ;;  %v117_v17 = vld [vmem:[#allocation5 + $0x258] sm:$0xff]  ;;  %v158_v18 = vld [vmem:[#allocation5 + $0x3a0] sm:$0xff]  ;;  %v199_v8 = vrot.slane %v937_v23, %v198_v63 }
  0x46   :  { %v684_v16 = vpack.c.bf16 %v118_v10, %v115_v9  ;;  %v161_v19 = vld [vmem:[#allocation5 + $0x3b8] sm:$0xff]  ;;  %v124_v21 = vld [vmem:[#allocation5 + $0x290] sm:$0xff]  ;;  %v686_v22 = vpack.c.bf16 %v117_v17, %v114_v13  ;;  %v123_v27 = vld [vmem:[#allocation5 + $0x288] sm:$0xff] }
  0x47   :  { %667 = vmatpush1.bf16.msra.mxu0 %v666_v33  ;;  %759 = vmatpush3.bf16.msra.mxu1 %v758_v35  ;;  %v121_v20 = vld [vmem:[#allocation5 + $0x278] sm:$0xff]  ;;  %v120_v24 = vld [vmem:[#allocation5 + $0x270] sm:$0xff]  ;;  %v774_v25 = vpack.c.bf16 %v161_v19, %v158_v18  ;;  %v167_v29 = vld [vmem:[#allocation5 + $0x3e8] sm:$0xff] }
  0x48   :  { %669 = vmatprep.subr.bf16.mxu0 %v668_v36  ;;  %761 = vmatprep.subr.bf16.mxu1 %v760_v38  ;;  %v688_v26 = vpack.c.bf16 %v124_v21, %v121_v20  ;;  %v164_v28 = vld [vmem:[#allocation5 + $0x3d0] sm:$0xff]  ;;  %v127_v30 = vld [vmem:[#allocation5 + $0x2a8] sm:$0xff]  ;;  %v130_v31 = vld [vmem:[#allocation5 + $0x2c0] sm:$0xff]  ;;  %v690_v32 = vpack.c.bf16 %v123_v27, %v120_v24 }
  0x49   :  { %v126_v33 = vld [vmem:[#allocation5 + $0x2a0] sm:$0xff]  ;;  %v777_v34 = vpack.c.bf16 %v167_v29, %v164_v28  ;;  %v692_v35 = vpack.c.bf16 %v130_v31, %v127_v30  ;;  %v129_v36 = vld [vmem:[#allocation5 + $0x2b8] sm:$0xff]  ;;  %v136_v40 = vld [vmem:[#allocation5 + $0x2f0] sm:$0xff] }
  0x4a   :  { %v170_v37 = vld [vmem:[#allocation5 + $0x400] sm:$0xff]  ;;  %v173_v38 = vld [vmem:[#allocation5 + $0x418] sm:$0xff]  ;;  %v694_v41 = vpack.c.bf16 %v129_v36, %v126_v33  ;;  %v132_v42 = vld [vmem:[#allocation5 + $0x2d0] sm:$0xff] }
  0x4b   :  { %671 = vmatpush1.bf16.msra.mxu0 %v670_v44  ;;  %763 = vmatpush3.bf16.msra.mxu1 %v762_v46  ;;  %v133_v39 = vld [vmem:[#allocation5 + $0x2d8] sm:$0xff]  ;;  %v780_v44 = vpack.c.bf16 %v173_v38, %v170_v37  ;;  %v135_v46 = vld [vmem:[#allocation5 + $0x2e8] sm:$0xff]  ;;  %v142_v50 = vld [vmem:[#allocation5 + $0x320] sm:$0xff] }
  0x4c   :  { %673 = vmatprep.subr.bf16.mxu0 %v672_v47  ;;  %764 = vmatprep.subr.bf16.mxu1 %v877_v59  ;;  %v696_v45 = vpack.c.bf16 %v136_v40, %v133_v39  ;;  %v176_v47 = vld [vmem:[#allocation5 + $0x430] sm:$0xff]  ;;  %v179_v48 = vld [vmem:[#allocation5 + $0x448] sm:$0xff]  ;;  %v698_v51 = vpack.c.bf16 %v135_v46, %v132_v42  ;;  %v138_v52 = vld [vmem:[#allocation5 + $0x300] sm:$0xff] }
  0x4d   :  { %v139_v49 = vld [vmem:[#allocation5 + $0x308] sm:$0xff]  ;;  %v185_v60 = vld [vmem:[#allocation5 + $0x478] sm:$0xff]  ;;  %v148_v62 = vld [vmem:[#allocation5 + $0x350] sm:$0xff] }
  0x4e   :  { %426 = vmatmul.mubr.f32.vlgmr.msra.gmra.mrb[0].mxu1 %v946_v54  ;;  %v700_v56 = vpack.c.bf16 %v142_v50, %v139_v49  ;;  %v145_v61 = vld [vmem:[#allocation5 + $0x338] sm:$0xff]  ;;  %v151_v6 = vld [vmem:[#allocation5 + $0x368] sm:$0xff]  ;;  %v154_v7 = vld [vmem:[#allocation5 + $0x380] sm:$0xff] }
  0x4f   :  { %675 = vmatpush1.bf16.msra.mxu0 %v674_v55  ;;  %766 = vmatpush3.bf16.msra.mxu1 %v765_v57  ;;  %v783_v55 = vpack.c.bf16 %v179_v48, %v176_v47  ;;  %v141_v57 = vld [vmem:[#allocation5 + $0x318] sm:$0xff]  ;;  %v704_v3 = vpack.c.bf16 %v148_v62, %v145_v61  ;;  %v708_v10 = vpack.c.bf16 %v154_v7, %v151_v6  ;;  %v156_v18 = vld [vmem:[#allocation5 + $0x390] sm:$0xff]  ;;  %v159_v23 = vld [vmem:[#allocation5 + $0x3a8] sm:$0xff] }
  0x50   :  { %677 = vmatprep.subr.bf16.mxu0 %v676_v58  ;;  %767 = vmatprep.subr.bf16.mxu1 %v877_v59  ;;  %v182_v58 = vld [vmem:[#allocation5 + $0x460] sm:$0xff]  ;;  %v702_v0 = vpack.c.bf16 %v141_v57, %v138_v52  ;;  %v153_v13 = vld [vmem:[#allocation5 + $0x378] sm:$0xff]  ;;  %v163_v19 = vld [vmem:[#allocation5 + $0x3c8] sm:$0xff]  ;;  %v714_v20 = vpack.c.bf16 %v159_v23, %v156_v18 }
  0x51   :  { %633 = vmatprep.mubr.msk.f32.mxu1 %vm878_vm0, %v879_v11  ;;  %v165_v24 = vld [vmem:[#allocation5 + $0x3d8] sm:$0xff]  ;;  %v168_v28 = vld [vmem:[#allocation5 + $0x3f0] sm:$0xff]  ;;  %v171_v29 = vld [vmem:[#allocation5 + $0x408] sm:$0xff] }
  0x52   :  { %v175_v30 = vld [vmem:[#allocation5 + $0x428] sm:$0xff]  ;;  %v178_v31 = vld [vmem:[#allocation5 + $0x440] sm:$0xff]  ;;  %v181_v36 = vld [vmem:[#allocation5 + $0x458] sm:$0xff] }
  0x53   :  { %679 = vmatpush1.bf16.msra.mxu0 %v678_v1  ;;  %769 = vmatpush3.bf16.msra.mxu1 %v768_v4  ;;  %v786_v1 = vpack.c.bf16 %v185_v60, %v182_v58  ;;  %v144_v4 = vld [vmem:[#allocation5 + $0x330] sm:$0xff]  ;;  %v724_v33 = vpack.c.bf16 %v178_v31, %v175_v30  ;;  %v186_v47 = vld [vmem:[%s989_s2] sm:$0x7]  ;;  %s881_s2 = smov [#allocation7]  }
  0x54   :  { %681 = vmatprep.subr.bf16.mxu0 %v680_v5  ;;  %770 = vmatprep.subr.bf16.mxu1 %v877_v59  ;;  %v147_v5 = vld [vmem:[#allocation5 + $0x348] sm:$0xff]  ;;  %v184_v37 = vld [vmem:[#allocation5 + $0x470] sm:$0xff]  ;;  %v215_v48 = vrot.slane %v186_v47, %v198_v63  ;;  %v207_v57 = vrot.slane %v186_v47, %v190_v43  ;;  %v211_v60 = vrot.slane %v186_v47, %v194_v15  ;;  %s539_s12 = sshll.u32 %s881_s2, 4  ;;  %s540_s12 = int_to_ptr.vmem [resolvable:$true] %s539_s12 }
  0x55   :  { %v706_v9 = vpack.c.bf16 %v147_v5, %v144_v4  ;;  %v728_v39 = vpack.c.bf16 %v184_v37, %v181_v36  ;;  %v180_v40 = vld [vmem:[#allocation5 + $0x450] sm:$0xff]  ;;  %s845_s13 = scalar_lea.vmem %s540_s12, 48  ;;  %s849_s14 = scalar_lea.vmem %s540_s12, 64 }
  0x56   :  { %p846_p2 = scmp.ne.s32.totalorder %s540_s12, %s845_s13  ;;  %p850_p3 = scmp.lt.s32.totalorder %s540_s12, %s540_s12 }
  0x57   :  { %683 = vmatpush1.bf16.msra.mxu0 %v682_v12  ;;  %772 = vmatpush3.bf16.msra.mxu1 %v771_v14  ;;  %v150_v12 = vld [vmem:[#allocation5 + $0x360] sm:$0xff]  ;;  %v160_v14 = vld [vmem:[#allocation5 + $0x3b0] sm:$0xff]  ;;  %p851_p4 = scmp.lt.s32.totalorder %s849_s14, %s845_s13 }
  0x58   :  { %685 = vmatprep.subr.bf16.mxu0 %v684_v16  ;;  %773 = vmatprep.subr.bf16.mxu1 %v877_v59  ;;  %v710_v16 = vpack.c.bf16 %v153_v13, %v150_v12 }
  0x59   :  { %p852_p5 = por %p851_p4, %p850_p3 }
  0x5b   :  { %687 = vmatpush1.bf16.msra.mxu0 %v686_v22  ;;  %775 = vmatpush3.bf16.msra.mxu1 %v774_v25  ;;  %v162_v22 = vld [vmem:[#allocation5 + $0x3c0] sm:$0xff]  ;;  %v169_v25 = vld [vmem:[#allocation5 + $0x3f8] sm:$0xff]  ;;  %p853_p6 = pnand %p852_p5, %p846_p2 }
  0x5c   :  { %689 = vmatprep.subr.bf16.mxu0 %v688_v26  ;;  %776 = vmatprep.subr.bf16.mxu1 %v877_v59  ;;  %v172_v26 = vld [vmem:[#allocation5 + $0x410] sm:$0xff] }
  0x5d   :  { %v720_v27 = vpack.c.bf16 %v172_v26, %v169_v25 }
  0x5f   :  { %691 = vmatpush1.bf16.msra.mxu0 %v690_v32  ;;  %778 = vmatpush3.bf16.msra.mxu1 %v777_v34  ;;  %v722_v32 = vpack.c.bf16 %v171_v29, %v168_v28  ;;  %v174_v34 = vld [vmem:[#allocation5 + $0x420] sm:$0xff] }
  0x60   :  { %693 = vmatprep.subr.bf16.mxu0 %v692_v35  ;;  %779 = vmatprep.subr.bf16.mxu1 %v877_v59  ;;  %v177_v35 = vld [vmem:[#allocation5 + $0x438] sm:$0xff] }
  0x61   :  { %v726_v38 = vpack.c.bf16 %v177_v35, %v174_v34 }
  0x63   :  { %695 = vmatpush1.bf16.msra.mxu0 %v694_v41  ;;  %781 = vmatpush3.bf16.msra.mxu1 %v780_v44  ;;  %v183_v41 = vld [vmem:[#allocation5 + $0x468] sm:$0xff] }
  0x64   :  { %697 = vmatprep.subr.bf16.mxu0 %v696_v45  ;;  %782 = vmatprep.subr.bf16.mxu1 %v877_v59  ;;  %v730_v42 = vpack.c.bf16 %v183_v41, %v180_v40 }
  0x67   :  { %699 = vmatpush1.bf16.msra.mxu0 %v698_v51  ;;  %784 = vmatpush3.bf16.msra.mxu1 %v783_v55  ;;  %v880_v55 = vmov 1966171168  }
  0x68   :  { %701 = vmatprep.subr.bf16.mxu0 %v700_v56  ;;  %785 = vmatprep.subr.bf16.mxu1 %v877_v59  ;;  %v157_v59 = vld [vmem:[#allocation5 + $0x398] sm:$0xff]  ;;  %v506_v56 = vunpack.c.l.s4 %v880_v55 }
  0x69   :  { %v712_v17 = vpack.c.bf16 %v160_v14, %v157_v59 }
  0x6a   :  { %284 = vmatmul.mubr.f32.vlgmr.msra.gmra.mrb[0].mxu0 %v946_v54  ;;  %v166_v54 = vld [vmem:[#allocation5 + $0x3e0] sm:$0xff]  ;;  %v507_v58 = vunpack.c.0.s8 %v506_v56 }
  0x6b   :  { %703 = vmatpush1.bf16.msra.mxu0 %v702_v0  ;;  %787 = vmatpush3.bf16.msra.mxu1 %v786_v1  ;;  %v716_v21 = vpack.c.bf16 %v166_v54, %v163_v19 }
  0x6c   :  { %705 = vmatprep.subr.bf16.mxu0 %v704_v3  ;;  %354 = vmatprep.mubr.f32.mxu0 %v879_v11  ;;  %v718_v11 = vpack.c.bf16 %v165_v24, %v162_v22  ;;  %v510_v1 = vsub.s32 %v507_v58, %v934_v2 }
  0x6e   :  { %634 = vmatmul.mubr.f32.vlgmr.msra.gmra.mrb[2].mxu1 %v199_v8 }
  0x6f   :  { %707 = vmatpush1.bf16.msra.mxu0 %v706_v9 }
  0x70   :  { %709 = vmatprep.subr.bf16.mxu0 %v708_v10 }
  0x73   :  { %711 = vmatpush1.bf16.msra.mxu0 %v710_v16 }
  0x74   :  { %713 = vmatprep.subr.bf16.mxu0 %v712_v17 }
  0x77   :  { %715 = vmatpush1.bf16.msra.mxu0 %v714_v20 }
  0x78   :  { %717 = vmatprep.subr.bf16.mxu0 %v716_v21 }
  0x7b   :  { %719 = vmatpush1.bf16.msra.mxu0 %v718_v11 }
  0x7c   :  { %721 = vmatprep.subr.bf16.mxu0 %v720_v27 }
  0x7f   :  { %723 = vmatpush1.bf16.msra.mxu0 %v722_v32 }
  0x80   :  { %725 = vmatprep.subr.bf16.mxu0 %v724_v33 }
  0x83   :  { %727 = vmatpush1.bf16.msra.mxu0 %v726_v38 }
  0x84   :  { %729 = vmatprep.subr.bf16.mxu0 %v728_v39 }
  0x87   :  { %731 = vmatpush1.bf16.msra.mxu0 %v730_v42 }
  0x8a   :  { %355 = vmatmul.mubr.f32.vlgmr.msra.gmra.mrb[0].mxu0 %v199_v8 }
 0x121   :  { %v581_v44 = vpop.f32.mrb[0].mxu1 }
 0x122   :  { %v582_v45 = vpop.f32.mrb[1].mxu1 }
 0x123   :  { %v583_v46 = vadd.f32 %v582_v45, %v581_v44 }
 0x125   :  { %v428_v49 = vadd.f32 %v583_v46, %v215_v48 }
 0x141   :  { %v497_v50 = vpop.f32.mrb[2].mxu1 }
 0x142   :  { %v498_v51 = vadd.f32 %v497_v50, %v428_v49  ;;  %v635_v52 = vpop.f32.mrb[3].mxu1 }
 0x144   :  { %v518_v4 = vrot.slane %v498_v51, %v510_v1 }
 0x15d   :  { %v356_v61 = vpop.f32.mrb[0].mxu0 }
 0x15e   :  { %v788_v62 = vadd.f32 %v356_v61, %v207_v57  ;;  %v358_v0 = vpop.f32.mrb[1].mxu0 }
 0x15f   :  { %v789_v3 = vadd.f32 %v358_v0, %v211_v60 }
 0x161   :  { %v504_v63 = vcombine.low %v788_v62, %v789_v3 }
 0x163   :  { %v511_v5 = vrot.slane %v504_v63, %v510_v1 }
 0x165   :  { %v519_v6 = vcombine.low %v511_v5, %v518_v4 }
 0x167   :  { %v526_v7 = vrot.slane %v519_v6, %v510_v1 }
 0x169   :  { %532 = vst.msk [vmem:[#allocation7] sm:$0x7] %vm530_vm1, %v526_v7 }
 0x16a   :  { %856 = shalt.err (!%p853_p6)
}
 0x16b   :  { %s857_s17 = scalar_lea.hbm %s990_s3, 48 }
 0x16c   :  { %p858_p7 = scmp.ne.s32.totalorder %s990_s3, %s857_s17  ;;  %p861_p8 = scmp.lt.u32.totalorder %s857_s17, %s990_s3 }
 0x16e   :  { %p863_p9 = pnand %p861_p8, %p858_p7 }
 0x170   :  { %866 = shalt.err (!%p863_p9)
}
 0x171   :  { %542 = dma.vmem_to_hbm [thread:$0]  %s540_s12, 48, %s990_s3, [#allocation4]  }
 0x172   :  { %871 = dma.done.wait [#allocation4], 48  }
 0x173   :  { %872 = vsyncadd [#allocation4], 4294967248 }
 0x174   :  { %546 = vsyncpa [#allocation3], 1 }
 0x175   :  { %547 = vsyncpa [#allocation6], 1 }
 0x176   :  { %548 = vsyncpa [#allocation4], 1 }

</bundles_post_ra>
